<compile_context>
chip_gen: v6e
topology: v6e:2x2x1
jax: 0.10.0
libtpu: 0.0.40
codegen_flags: <defaults>
</compile_context>

<pallas_src>
import functools

import jax
import jax.numpy as jnp
from jax.experimental import pallas as pl
from jax.experimental.pallas import tpu as pltpu


# Headroom below v7x's 64 MiB physical VMEM; also safely under v5e/v6e 128 MiB.
_VMEM_LIMIT_BYTES = 48 * 1024 * 1024


# ------------------------- helpers -------------------------


def _round_up(x, m):
    return (x + m - 1) // m * m


def _choose_tile(dim, pref, align):
    """Largest useful tile: `pref` for big dims, else the dim rounded to align."""
    if dim >= pref:
        return pref
    return _round_up(dim, align)


def _pad2d(a, m_to, n_to):
    m, n = a.shape
    if m == m_to and n == n_to:
        return a
    return jnp.pad(a, ((0, m_to - m), (0, n_to - n)))


def _split_tile_for_megacore(dim_p, tile):
    """If this parallel axis has a single block, try a smaller divisor tile so
    v7x's two TensorCores both get work (no-op on v5e/v6e: 1 TC)."""
    if dim_p // tile >= 2:
        return tile
    for cand in (256, 128):
        if tile % cand == 0 and dim_p % cand == 0 and dim_p // cand >= 2:
            return cand
    return tile


# ------------------------- kernels -------------------------


def _swiglu_hidden_kernel(x_ref, w1_ref, b1_ref, w2_ref, b2_ref, o_ref,
                          acc1_ref, acc2_ref):
    """hidden = SiLU(x @ w1 + b1) * (x @ w2 + b2); K tiled on grid axis 2.

    x/w1/w2 are bf16 MXU operands, accumulation and the SiLU epilogue are f32,
    output tile is written bf16 (lane-dense).
    """
    k = pl.program_id(2)

    @pl.when(k == 0)
    def _():
        # Fold the bias into the accumulator init (replaces the zero-fill and
        # removes two full tm x tn adds from the epilogue step).
        acc1_ref[...] = jnp.broadcast_to(b1_ref[...], acc1_ref.shape)
        acc2_ref[...] = jnp.broadcast_to(b2_ref[...], acc2_ref.shape)

    x = x_ref[...]  # one bf16 x-tile DMA feeds both MXU matmuls
    acc1_ref[...] += jnp.dot(x, w1_ref[...], preferred_element_type=jnp.float32)
    acc2_ref[...] += jnp.dot(x, w2_ref[...], preferred_element_type=jnp.float32)

    @pl.when(k == pl.num_programs(2) - 1)
    def _():
        x1 = acc1_ref[...]
        x2 = acc2_ref[...]
        # SiLU(x1) * x2 fused while the tile is still in VMEM (f32 VPU/EUP).
        o_ref[...] = (x1 * jax.nn.sigmoid(x1) * x2).astype(o_ref.dtype)


def _linear_bias_kernel(x_ref, w_ref, b_ref, o_ref, acc_ref):
    """y = x @ w + b; K tiled on grid axis 2, bias folded into acc init."""
    k = pl.program_id(2)

    @pl.when(k == 0)
    def _():
        acc_ref[...] = jnp.broadcast_to(b_ref[...], acc_ref.shape)

    acc_ref[...] += jnp.dot(x_ref[...], w_ref[...],
                            preferred_element_type=jnp.float32)

    @pl.when(k == pl.num_programs(2) - 1)
    def _():
        o_ref[...] = acc_ref[...].astype(o_ref.dtype)


# ------------------------- pallas_call wrappers (padded operands) -----------


def _swiglu_hidden_padded(xp, w1p, b1p, w2p, b2p, tm, th, tk):
    """xp:(Mp,Kp) bf16; w1p,w2p:(Kp,Hp) bf16; b*:(1,Hp) f32 -> (Mp,Hp) bf16."""
    Mp, Kp = xp.shape
    Hp = w1p.shape[1]
    grid = (Mp // tm, Hp // th, Kp // tk)
    return pl.pallas_call(
        _swiglu_hidden_kernel,
        out_shape=jax.ShapeDtypeStruct((Mp, Hp), jnp.bfloat16),
        grid_spec=pltpu.PrefetchScalarGridSpec(
            num_scalar_prefetch=0,
            grid=grid,
            in_specs=[
                pl.BlockSpec((tm, tk), lambda i, j, k: (i, k)),   # x
                pl.BlockSpec((tk, th), lambda i, j, k: (k, j)),   # w1
                pl.BlockSpec((1, th), lambda i, j, k: (0, j)),    # b1
                pl.BlockSpec((tk, th), lambda i, j, k: (k, j)),   # w2
                pl.BlockSpec((1, th), lambda i, j, k: (0, j)),    # b2
            ],
            out_specs=pl.BlockSpec((tm, th), lambda i, j, k: (i, j)),
            scratch_shapes=[
                pltpu.VMEM((tm, th), jnp.float32),
                pltpu.VMEM((tm, th), jnp.float32),
            ],
        ),
        compiler_params=pltpu.CompilerParams(
            dimension_semantics=("parallel", "parallel", "arbitrary"),
            vmem_limit_bytes=_VMEM_LIMIT_BYTES,
        ),
    )(xp, w1p, b1p, w2p, b2p)


def _linear_bias_padded(xp, wp, bp, tm, tn, tk):
    """xp:(Mp,Kp) bf16; wp:(Kp,Np) bf16; bp:(1,Np) f32 -> (Mp,Np) f32."""
    Mp, Kp = xp.shape
    Np = wp.shape[1]
    grid = (Mp // tm, Np // tn, Kp // tk)
    return pl.pallas_call(
        _linear_bias_kernel,
        out_shape=jax.ShapeDtypeStruct((Mp, Np), jnp.float32),
        grid_spec=pltpu.PrefetchScalarGridSpec(
            num_scalar_prefetch=0,
            grid=grid,
            in_specs=[
                pl.BlockSpec((tm, tk), lambda i, j, k: (i, k)),
                pl.BlockSpec((tk, tn), lambda i, j, k: (k, j)),
                pl.BlockSpec((1, tn), lambda i, j, k: (0, j)),
            ],
            out_specs=pl.BlockSpec((tm, tn), lambda i, j, k: (i, j)),
            scratch_shapes=[pltpu.VMEM((tm, tn), jnp.float32)],
        ),
        compiler_params=pltpu.CompilerParams(
            dimension_semantics=("parallel", "parallel", "arbitrary"),
            vmem_limit_bytes=_VMEM_LIMIT_BYTES,
        ),
    )(xp, wp, bp)


# ------------------------- params preparation (pad + cast ONCE) -------------


def prepare_swiglu_params(params, *, tk=512, th=512, tn=512):
    """Pad weights/biases to tile multiples and cast weights to bf16 once.

    th is both the H-tile of kernel 1 and the K-tile of kernel 2, so the
    hidden intermediate can stay padded between the two pallas_calls.
    """
    K, Hf = params["w1"].shape
    N = params["w3"].shape[1]
    tk = _choose_tile(K, tk, 128)
    th = _choose_tile(Hf, th, 128)
    tn = _choose_tile(N, tn, 128)
    Kp, Hp, Np = _round_up(K, tk), _round_up(Hf, th), _round_up(N, tn)
    return {
        "w1": _pad2d(params["w1"], Kp, Hp).astype(jnp.bfloat16),
        "b1": _pad2d(params["b1"].reshape(1, Hf), 1, Hp).astype(jnp.float32),
        "w2": _pad2d(params["w2"], Kp, Hp).astype(jnp.bfloat16),
        "b2": _pad2d(params["b2"].reshape(1, Hf), 1, Hp).astype(jnp.float32),
        "w3": _pad2d(params["w3"], Hp, Np).astype(jnp.bfloat16),
        "b3": _pad2d(params["b3"].reshape(1, N), 1, Np).astype(jnp.float32),
        "dims": (K, Hf, N),
        "tiles": (tk, th, tn),
    }


# ------------------------- SwiGLU module forward -------------------------


def swiglu_forward(x, prep, *, tm=512):
    """SwiGLU forward.  x: (..., in_features) -> (..., out_features).

    Matches: x1 = w1(x); x2 = w2(x); h = SiLU(x1)*x2; h = Identity(h);
             y = w3(h); y = Dropout(p=0)(y).
    """
    K, Hf, N = prep["dims"]
    tk, th, tn = prep["tiles"]
    lead = x.shape[:-1]

    x2d = x.reshape(-1, K)
    M = x2d.shape[0]
    tm = _choose_tile(M, tm, 16)        # multiple of 16 for bf16 sublane packing
    Mp = _round_up(M, tm)
    Kp = prep["w1"].shape[0]
    Hp = prep["w1"].shape[1]
    Np = prep["w3"].shape[1]

    # Decode-like shapes: if the M axis has a single block, shrink the second
    # parallel tile so it still splits across v7x's two TensorCores.
    if Mp // tm == 1:
        th = _split_tile_for_megacore(Hp, th)
        tn = _split_tile_for_megacore(Np, tn)

    xp = _pad2d(x2d, Mp, Kp).astype(jnp.bfloat16)

    # Kernel 1: fused dual projection + SiLU gating -> padded bf16 hidden.
    hidden = _swiglu_hidden_padded(xp, prep["w1"], prep["b1"],
                                   prep["w2"], prep["b2"], tm, th, tk)
    # ffn_ln = nn.Identity() (subln=False) and dropout p=0.0 -> identities.
    # Kernel 2: output projection; hidden stays padded, no slice/re-pad.
    out = _linear_bias_padded(hidden, prep["w3"], prep["b3"], tm, tn, th)
    return out[:M, :N].reshape(*lead, N)


def swiglu_reference(x, params):
    """Pure-JAX f32 reference for correctness checking."""
    x1 = x @ params["w1"] + params["b1"]
    x2 = x @ params["w2"] + params["b2"]
    h = jax.nn.silu(x1) * x2
    return h @ params["w3"] + params["b3"]


def init_params(key, in_features, hidden_features=None, out_features=None):
    hidden_features = hidden_features or in_features
    out_features = out_features or in_features
    ks = jax.random.split(key, 6)

    def w(k, shape, scale=0.02):
        return (scale * jax.random.normal(k, shape)).astype(jnp.float32)

    # Linear weights stored pre-transposed: (in_features, out_features).
    return {
        "w1": w(ks[0], (in_features, hidden_features)),
        "b1": w(ks[1], (hidden_features,)),
        "w2": w(ks[2], (in_features, hidden_features)),
        "b2": w(ks[3], (hidden_features,)),
        "w3": w(ks[4], (hidden_features, out_features)),
        "b3": w(ks[5], (out_features,)),
    }


if __name__ == "__main__":
    key = jax.random.PRNGKey(0)
    kx, kp = jax.random.split(key)

    B, L = 2, 8
    in_features = 64
    hidden_features = 128
    out_features = 64  # == in_features (PyTorch default out_features=None)

    x = jax.random.normal(kx, (B, L, in_features), dtype=jnp.float32)
    params = init_params(kp, in_features, hidden_features, out_features)
    prep = prepare_swiglu_params(params)   # pad + bf16-cast weights once

    fwd = jax.jit(lambda xx: swiglu_forward(xx, prep))
    out = jax.block_until_ready(fwd(x))

    assert out.shape == (B, L, out_features)
    assert bool(jnp.all(jnp.isfinite(out)))

    ref = swiglu_reference(x, params)
    # bf16 MXU operands / bf16 hidden with f32 accumulation -> looser tolerance.
    assert bool(jnp.allclose(out, ref, rtol=2e-2, atol=2e-3))

    print("KERNEL_OK")
</pallas_src>

<mosaic_0001>
module attributes {stable_mosaic.version = 11 : i64} {
  func.func @_linear_bias_kernel(%arg0: i32, %arg1: i32, %arg2: i32, %arg3: memref<16x128xbf16, #tpu.memory_space<vmem>>, %arg4: memref<128x128xbf16, #tpu.memory_space<vmem>>, %arg5: memref<1x128xf32, #tpu.memory_space<vmem>>, %arg6: memref<16x128xf32, #tpu.memory_space<vmem>>, %arg7: memref<16x128xf32, #tpu.memory_space<vmem>>) attributes {dimension_semantics = [#tpu.dimension_semantics<parallel>, #tpu.dimension_semantics<parallel>, #tpu.dimension_semantics<arbitrary>], iteration_bounds = array<i64: 1, 1, 1>, scalar_prefetch = 0 : i64, scratch_operands = 1 : i64, tpu.core_type = #tpu.core_type<tc>, window_params = [{transform_indices = @transform_0, window_bounds = array<i64: 16, 128>}, {transform_indices = @transform_1, window_bounds = array<i64: 128, 128>}, {transform_indices = @transform_2, window_bounds = array<i64: 1, 128>}, {transform_indices = @transform_3, window_bounds = array<i64: 16, 128>}]} {
    %c0_i32 = arith.constant 0 : i32
    %0 = arith.cmpi eq, %arg2, %c0_i32 : i32
    %1 = arith.extui %0 : i1 to i32
    %c0_i32_0 = arith.constant 0 : i32
    %2 = arith.cmpi ne, %1, %c0_i32_0 : i32
    scf.if %2 {
      %c0_10 = arith.constant 0 : index
      %c0_11 = arith.constant 0 : index
      %12 = vector.load %arg5[%c0_10, %c0_11] : memref<1x128xf32, #tpu.memory_space<vmem>>, vector<1x128xf32>
      %13 = vector.shape_cast %12 : vector<1x128xf32> to vector<1x128xf32>
      %14 = vector.broadcast %13 : vector<1x128xf32> to vector<16x128xf32>
      %c0_12 = arith.constant 0 : index
      %c0_13 = arith.constant 0 : index
      %15 = vector.load %arg7[%c0_12, %c0_13] : memref<16x128xf32, #tpu.memory_space<vmem>>, vector<16x128xf32>
      tpu.vector_store %arg7[%c0_12, %c0_13], %14 {strides = array<i32>} : memref<16x128xf32, #tpu.memory_space<vmem>>, vector<16x128xf32>,
    } else {
    }
    %c0 = arith.constant 0 : index
    %c0_1 = arith.constant 0 : index
    %3 = vector.load %arg7[%c0, %c0_1] : memref<16x128xf32, #tpu.memory_space<vmem>>, vector<16x128xf32>
    %c0_2 = arith.constant 0 : index
    %c0_3 = arith.constant 0 : index
    %4 = vector.load %arg3[%c0_2, %c0_3] : memref<16x128xbf16, #tpu.memory_space<vmem>>, vector<16x128xbf16>
    %c0_4 = arith.constant 0 : index
    %c0_5 = arith.constant 0 : index
    %5 = vector.load %arg4[%c0_4, %c0_5] : memref<128x128xbf16, #tpu.memory_space<vmem>>, vector<128x128xbf16>
    %cst = arith.constant dense<0.000000e+00> : vector<16x128xf32>
    %6 = tpu.matmul %4, %5, %cst {dimension_numbers = #tpu.dot_dimension_numbers<[1], [0], [0], [1], [0, 0, 1, 1], [], []>} : vector<16x128xbf16>, vector<128x128xbf16>, vector<16x128xf32> -> vector<16x128xf32>
    %7 = arith.addf %3, %6 : vector<16x128xf32>
    %c0_6 = arith.constant 0 : index
    %c0_7 = arith.constant 0 : index
    %8 = vector.load %arg7[%c0_6, %c0_7] : memref<16x128xf32, #tpu.memory_space<vmem>>, vector<16x128xf32>
    tpu.vector_store %arg7[%c0_6, %c0_7], %7 {strides = array<i32>} : memref<16x128xf32, #tpu.memory_space<vmem>>, vector<16x128xf32>,
    %c0_i32_8 = arith.constant 0 : i32
    %9 = arith.cmpi eq, %arg2, %c0_i32_8 : i32
    %10 = arith.extui %9 : i1 to i32
    %c0_i32_9 = arith.constant 0 : i32
    %11 = arith.cmpi ne, %10, %c0_i32_9 : i32
    scf.if %11 {
      %c0_10 = arith.constant 0 : index
      %c0_11 = arith.constant 0 : index
      %12 = vector.load %arg7[%c0_10, %c0_11] : memref<16x128xf32, #tpu.memory_space<vmem>>, vector<16x128xf32>
      %c0_12 = arith.constant 0 : index
      %c0_13 = arith.constant 0 : index
      %13 = vector.load %arg6[%c0_12, %c0_13] : memref<16x128xf32, #tpu.memory_space<vmem>>, vector<16x128xf32>
      tpu.vector_store %arg6[%c0_12, %c0_13], %12 {strides = array<i32>} : memref<16x128xf32, #tpu.memory_space<vmem>>, vector<16x128xf32>,
    } else {
    }
    return
  }
  func.func @transform_0(%arg0: i32, %arg1: i32, %arg2: i32) -> (i32, i32) {
    %c0_i32 = arith.constant 0 : i32
    return %arg0, %arg2 : i32, i32
  }
  func.func @transform_1(%arg0: i32, %arg1: i32, %arg2: i32) -> (i32, i32) {
    %c0_i32 = arith.constant 0 : i32
    return %arg2, %arg1 : i32, i32
  }
  func.func @transform_2(%arg0: i32, %arg1: i32, %arg2: i32) -> (i32, i32) {
    %c0_i32 = arith.constant 0 : i32
    %c0_i32_0 = arith.constant 0 : i32
    return %c0_i32, %arg1 : i32, i32
  }
  func.func @transform_3(%arg0: i32, %arg1: i32, %arg2: i32) -> (i32, i32) {
    %c0_i32 = arith.constant 0 : i32
    return %arg0, %arg1 : i32, i32
  }
}

module attributes {stable_mosaic.version = 11 : i64} {
  func.func @_swiglu_hidden_kernel(%arg0: i32, %arg1: i32, %arg2: i32, %arg3: memref<16x128xbf16, #tpu.memory_space<vmem>>, %arg4: memref<128x128xbf16, #tpu.memory_space<vmem>>, %arg5: memref<1x128xf32, #tpu.memory_space<vmem>>, %arg6: memref<128x128xbf16, #tpu.memory_space<vmem>>, %arg7: memref<1x128xf32, #tpu.memory_space<vmem>>, %arg8: memref<16x128xbf16, #tpu.memory_space<vmem>>, %arg9: memref<16x128xf32, #tpu.memory_space<vmem>>, %arg10: memref<16x128xf32, #tpu.memory_space<vmem>>) attributes {dimension_semantics = [#tpu.dimension_semantics<parallel>, #tpu.dimension_semantics<parallel>, #tpu.dimension_semantics<arbitrary>], iteration_bounds = array<i64: 1, 1, 1>, scalar_prefetch = 0 : i64, scratch_operands = 2 : i64, tpu.core_type = #tpu.core_type<tc>, window_params = [{transform_indices = @transform_0, window_bounds = array<i64: 16, 128>}, {transform_indices = @transform_1, window_bounds = array<i64: 128, 128>}, {transform_indices = @transform_2, window_bounds = array<i64: 1, 128>}, {transform_indices = @transform_3, window_bounds = array<i64: 128, 128>}, {transform_indices = @transform_4, window_bounds = array<i64: 1, 128>}, {transform_indices = @transform_5, window_bounds = array<i64: 16, 128>}]} {
    %c0_i32 = arith.constant 0 : i32
    %0 = arith.cmpi eq, %arg2, %c0_i32 : i32
    %1 = arith.extui %0 : i1 to i32
    %c0_i32_0 = arith.constant 0 : i32
    %2 = arith.cmpi ne, %1, %c0_i32_0 : i32
    scf.if %2 {
      %c0_17 = arith.constant 0 : index
      %c0_18 = arith.constant 0 : index
      %17 = vector.load %arg5[%c0_17, %c0_18] : memref<1x128xf32, #tpu.memory_space<vmem>>, vector<1x128xf32>
      %18 = vector.shape_cast %17 : vector<1x128xf32> to vector<1x128xf32>
      %19 = vector.broadcast %18 : vector<1x128xf32> to vector<16x128xf32>
      %c0_19 = arith.constant 0 : index
      %c0_20 = arith.constant 0 : index
      %20 = vector.load %arg9[%c0_19, %c0_20] : memref<16x128xf32, #tpu.memory_space<vmem>>, vector<16x128xf32>
      tpu.vector_store %arg9[%c0_19, %c0_20], %19 {strides = array<i32>} : memref<16x128xf32, #tpu.memory_space<vmem>>, vector<16x128xf32>,
      %c0_21 = arith.constant 0 : index
      %c0_22 = arith.constant 0 : index
      %21 = vector.load %arg7[%c0_21, %c0_22] : memref<1x128xf32, #tpu.memory_space<vmem>>, vector<1x128xf32>
      %22 = vector.shape_cast %21 : vector<1x128xf32> to vector<1x128xf32>
      %23 = vector.broadcast %22 : vector<1x128xf32> to vector<16x128xf32>
      %c0_23 = arith.constant 0 : index
      %c0_24 = arith.constant 0 : index
      %24 = vector.load %arg10[%c0_23, %c0_24] : memref<16x128xf32, #tpu.memory_space<vmem>>, vector<16x128xf32>
      tpu.vector_store %arg10[%c0_23, %c0_24], %23 {strides = array<i32>} : memref<16x128xf32, #tpu.memory_space<vmem>>, vector<16x128xf32>,
    } else {
    }
    %c0 = arith.constant 0 : index
    %c0_1 = arith.constant 0 : index
    %3 = vector.load %arg3[%c0, %c0_1] : memref<16x128xbf16, #tpu.memory_space<vmem>>, vector<16x128xbf16>
    %c0_2 = arith.constant 0 : index
    %c0_3 = arith.constant 0 : index
    %4 = vector.load %arg9[%c0_2, %c0_3] : memref<16x128xf32, #tpu.memory_space<vmem>>, vector<16x128xf32>
    %c0_4 = arith.constant 0 : index
    %c0_5 = arith.constant 0 : index
    %5 = vector.load %arg4[%c0_4, %c0_5] : memref<128x128xbf16, #tpu.memory_space<vmem>>, vector<128x128xbf16>
    %cst = arith.constant dense<0.000000e+00> : vector<16x128xf32>
    %6 = tpu.matmul %3, %5, %cst {dimension_numbers = #tpu.dot_dimension_numbers<[1], [0], [0], [1], [0, 0, 1, 1], [], []>} : vector<16x128xbf16>, vector<128x128xbf16>, vector<16x128xf32> -> vector<16x128xf32>
    %7 = arith.addf %4, %6 : vector<16x128xf32>
    %c0_6 = arith.constant 0 : index
    %c0_7 = arith.constant 0 : index
    %8 = vector.load %arg9[%c0_6, %c0_7] : memref<16x128xf32, #tpu.memory_space<vmem>>, vector<16x128xf32>
    tpu.vector_store %arg9[%c0_6, %c0_7], %7 {strides = array<i32>} : memref<16x128xf32, #tpu.memory_space<vmem>>, vector<16x128xf32>,
    %c0_8 = arith.constant 0 : index
    %c0_9 = arith.constant 0 : index
    %9 = vector.load %arg10[%c0_8, %c0_9] : memref<16x128xf32, #tpu.memory_space<vmem>>, vector<16x128xf32>
    %c0_10 = arith.constant 0 : index
    %c0_11 = arith.constant 0 : index
    %10 = vector.load %arg6[%c0_10, %c0_11] : memref<128x128xbf16, #tpu.memory_space<vmem>>, vector<128x128xbf16>
    %cst_12 = arith.constant dense<0.000000e+00> : vector<16x128xf32>
    %11 = tpu.matmul %3, %10, %cst_12 {dimension_numbers = #tpu.dot_dimension_numbers<[1], [0], [0], [1], [0, 0, 1, 1], [], []>} : vector<16x128xbf16>, vector<128x128xbf16>, vector<16x128xf32> -> vector<16x128xf32>
    %12 = arith.addf %9, %11 : vector<16x128xf32>
    %c0_13 = arith.constant 0 : index
    %c0_14 = arith.constant 0 : index
    %13 = vector.load %arg10[%c0_13, %c0_14] : memref<16x128xf32, #tpu.memory_space<vmem>>, vector<16x128xf32>
    tpu.vector_store %arg10[%c0_13, %c0_14], %12 {strides = array<i32>} : memref<16x128xf32, #tpu.memory_space<vmem>>, vector<16x128xf32>,
    %c0_i32_15 = arith.constant 0 : i32
    %14 = arith.cmpi eq, %arg2, %c0_i32_15 : i32
    %15 = arith.extui %14 : i1 to i32
    %c0_i32_16 = arith.constant 0 : i32
    %16 = arith.cmpi ne, %15, %c0_i32_16 : i32
    scf.if %16 {
      %c0_17 = arith.constant 0 : index
      %c0_18 = arith.constant 0 : index
      %17 = vector.load %arg9[%c0_17, %c0_18] : memref<16x128xf32, #tpu.memory_space<vmem>>, vector<16x128xf32>
      %c0_19 = arith.constant 0 : index
      %c0_20 = arith.constant 0 : index
      %18 = vector.load %arg10[%c0_19, %c0_20] : memref<16x128xf32, #tpu.memory_space<vmem>>, vector<16x128xf32>
      %19 = arith.negf %17 : vector<16x128xf32>
      %20 = math.exp %19 : vector<16x128xf32>
      %cst_21 = arith.constant 1.000000e+00 : f32
      %21 = vector.broadcast %cst_21 : f32 to vector<16x128xf32>
      %22 = arith.addf %21, %20 : vector<16x128xf32>
      %23 = arith.divf %21, %22 : vector<16x128xf32>
      %24 = arith.mulf %17, %23 : vector<16x128xf32>
      %25 = arith.mulf %24, %18 : vector<16x128xf32>
      %26 = arith.truncf %25 : vector<16x128xf32> to vector<16x128xbf16>
      %c0_22 = arith.constant 0 : index
      %c0_23 = arith.constant 0 : index
      %27 = vector.load %arg8[%c0_22, %c0_23] : memref<16x128xbf16, #tpu.memory_space<vmem>>, vector<16x128xbf16>
      tpu.vector_store %arg8[%c0_22, %c0_23], %26 {strides = array<i32>} : memref<16x128xbf16, #tpu.memory_space<vmem>>, vector<16x128xbf16>,
    } else {
    }
    return
  }
  func.func @transform_0(%arg0: i32, %arg1: i32, %arg2: i32) -> (i32, i32) {
    %c0_i32 = arith.constant 0 : i32
    return %arg0, %arg2 : i32, i32
  }
  func.func @transform_1(%arg0: i32, %arg1: i32, %arg2: i32) -> (i32, i32) {
    %c0_i32 = arith.constant 0 : i32
    return %arg2, %arg1 : i32, i32
  }
  func.func @transform_2(%arg0: i32, %arg1: i32, %arg2: i32) -> (i32, i32) {
    %c0_i32 = arith.constant 0 : i32
    %c0_i32_0 = arith.constant 0 : i32
    return %c0_i32, %arg1 : i32, i32
  }
  func.func @transform_3(%arg0: i32, %arg1: i32, %arg2: i32) -> (i32, i32) {
    %c0_i32 = arith.constant 0 : i32
    return %arg2, %arg1 : i32, i32
  }
  func.func @transform_4(%arg0: i32, %arg1: i32, %arg2: i32) -> (i32, i32) {
    %c0_i32 = arith.constant 0 : i32
    %c0_i32_0 = arith.constant 0 : i32
    return %c0_i32, %arg1 : i32, i32
  }
  func.func @transform_5(%arg0: i32, %arg1: i32, %arg2: i32) -> (i32, i32) {
    %c0_i32 = arith.constant 0 : i32
    return %arg0, %arg1 : i32, i32
  }
}

</mosaic_0001>

<bundles_post_ra>
// kernel: _lambda_.3
= control target key start
LH: loop header
LB: loop body
LE: loop exit
PB: predicated region body
PF: predicated region fallthrough
CT: control target
= control target key end

     0   :  { %v208_v0 = vmov 0.0   ;;  %vm209_vm0 = vmmov 0   ;;  %s266_s1 = inlined_call_operand.vmem [shape: bf16[128,128], index: 1, kind: input, shape index: {}]   ;;  %s267_s0 = inlined_call_operand.vmem [shape: bf16[16,128], index: 0, kind: input, shape index: {}]   ;;  %s268_s2 = inlined_call_operand.vmem [shape: f32[1,128], index: 2, kind: input, shape index: {}]   ;;  %s269_s3 = inlined_call_operand.vmem [shape: f32[16,128], index: 3, kind: output, shape index: {}]  }
   0x1   :  { %177 = vmatprep.subr.bf16.mxu0 %v208_v0  ;;  %v199_v1 = vld [vmem:[%s266_s1 + $0x38] sm:$0xff]   ;;  %193 = vmatprep.mubr.msk.bf16.mxu0 %vm209_vm0, %v208_v0  ;;  %v200_v2 = vld [vmem:[%s266_s1 + $0x30] sm:$0xff]   ;;  %v201_v3 = vld [vmem:[%s266_s1 + $0x28] sm:$0xff]  }
   0x2   :  { %178 = vmatpush3.bf16.msra.mxu0 %v199_v1  ;;  %v202_v4 = vld [vmem:[%s266_s1 + $0x20] sm:$0xff]   ;;  %v203_v5 = vld [vmem:[%s266_s1 + $0x18] sm:$0xff]   ;;  %v204_v6 = vld [vmem:[%s266_s1 + $0x10] sm:$0xff]  }
   0x3   :  { %179 = vmatprep.subr.bf16.mxu0 %v208_v0  ;;  %v205_v7 = vld [vmem:[%s266_s1 + $0x8] sm:$0xff]   ;;  %v206_v8 = vld [vmem:[%s266_s1] sm:$0xff]  }
   0x4   :  { %v207_v9 = vld [vmem:[%s267_s0] sm:$0xff]  }
   0x5   :  { %v158_v10 = vld [vmem:[%s268_s2] ss:$0 sm:$0xff] }
   0x6   :  { %180 = vmatpush3.bf16.msra.mxu0 %v200_v2 }
   0x7   :  { %181 = vmatprep.subr.bf16.mxu0 %v208_v0 }
   0xa   :  { %182 = vmatpush3.bf16.msra.mxu0 %v201_v3 }
   0xb   :  { %183 = vmatprep.subr.bf16.mxu0 %v208_v0 }
   0xe   :  { %184 = vmatpush3.bf16.msra.mxu0 %v202_v4 }
   0xf   :  { %185 = vmatprep.subr.bf16.mxu0 %v208_v0 }
  0x12   :  { %186 = vmatpush3.bf16.msra.mxu0 %v203_v5 }
  0x13   :  { %187 = vmatprep.subr.bf16.mxu0 %v208_v0 }
  0x16   :  { %188 = vmatpush3.bf16.msra.mxu0 %v204_v6 }
  0x17   :  { %189 = vmatprep.subr.bf16.mxu0 %v208_v0 }
  0x1a   :  { %190 = vmatpush3.bf16.msra.mxu0 %v205_v7 }
  0x1b   :  { %191 = vmatprep.subr.bf16.mxu0 %v208_v0 }
  0x1e   :  { %192 = vmatpush3.bf16.msra.mxu0 %v206_v8 }
  0x21   :  { %194 = vmatmul.mubr.bf16.vlgmr.msra.gmra.mxu0 %v207_v9 }
  0xe1   :  { %v136_v11 = vpop.f32.mrf.mxu0 }
  0xe2   :  { %v143_v12 = vadd.f32 %v158_v10, %v136_v11 }
  0xe3   :  { %v195_v13 = vpop.f32.mrf.mxu0 }
  0xe4   :  { %152 = vst [vmem:[%s269_s3] sm:$0xff] %v143_v12 }
  0xe5   :  { %v139_v14 = vpop.f32.mrf.mxu0 }
  0xe6   :  { %v144_v15 = vadd.f32 %v158_v10, %v139_v14 }
  0xe7   :  { %v196_v16 = vpop.f32.mrf.mxu0 }
  0xe8   :  { %153 = vst [vmem:[%s269_s3 + $0x8] sm:$0xff] %v144_v15 }

// kernel: _lambda_.2
= control target key start
LH: loop header
LB: loop body
LE: loop exit
PB: predicated region body
PF: predicated region fallthrough
CT: control target
= control target key end

     0   :  { %10 = vsyncpa [#allocation5], 0  ;;  %s557_s0 = inlined_call_operand.vmem [shape: bf16[16,128], index: 0, kind: input, shape index: {}]   ;;  %s558_s1 = inlined_call_operand.hbm [shape: bf16[128,128], index: 1, kind: input, shape index: {}]   ;;  %s559_s2 = inlined_call_operand.vmem [shape: f32[1,128], index: 2, kind: input, shape index: {}]   ;;  %s560_s3 = inlined_call_operand.hbm [shape: bf16[128,128], index: 3, kind: input, shape index: {}]   ;;  %s561_s4 = inlined_call_operand.vmem [shape: f32[1,128], index: 4, kind: input, shape index: {}]   ;;  %s562_s5 = inlined_call_operand.vmem [shape: bf16[16,128], index: 5, kind: output, shape index: {}]  }
   0x1   :  { %11 = vsyncpa [#allocation7], 0  ;;  %s503_s18 = smov [#allocation4]  }
   0x2   :  { %s19_s19 = sshll.u32 %s503_s18, 4  ;;  %s20_s19 = int_to_ptr.vmem [resolvable:$true] %s19_s19 }
   0x3   :  { %s467_s20 = scalar_lea.vmem %s20_s19, 1024  ;;  %p472_p1 = scmp.lt.s32.totalorder %s20_s19, %s20_s19 }
   0x4   :  { %p468_p0 = scmp.ne.s32.totalorder %s20_s19, %s467_s20  ;;  %p473_p2 = scmp.lt.s32.totalorder %s467_s20, %s467_s20 }
   0x6   :  { %p474_p3 = por %p473_p2, %p472_p1 }
   0x8   :  { %p475_p4 = pnand %p474_p3, %p468_p0 }
   0xa   :  { %478 = shalt.err (!%p475_p4)
}
   0xb   :  { %s504_s21 = smov 64   ;;  %s505_s22 = smov 4  }
   0xc   :  { %25 = dma.hbm_to_vmem [thread:$0]  %s558_s1, 1024, %s20_s19, [#allocation5], %s504_s21, %s504_s21, %s505_s22  }
   0xd   :  { %s506_s25 = smov [#allocation6]  }
   0xe   :  { %s33_s26 = sshll.u32 %s506_s25, 4  ;;  %s34_s26 = int_to_ptr.vmem [resolvable:$true] %s33_s26 }
   0xf   :  { %s487_s27 = scalar_lea.vmem %s34_s26, 1024  ;;  %p492_p6 = scmp.lt.s32.totalorder %s34_s26, %s34_s26 }
  0x10   :  { %p488_p5 = scmp.ne.s32.totalorder %s34_s26, %s487_s27  ;;  %p493_p7 = scmp.lt.s32.totalorder %s487_s27, %s487_s27 }
  0x12   :  { %p494_p8 = por %p493_p7, %p492_p6 }
  0x14   :  { %p495_p9 = pnand %p494_p8, %p488_p5 }
  0x16   :  { %498 = shalt.err (!%p495_p9)
}
  0x17   :  { %39 = dma.hbm_to_vmem [thread:$0]  %s560_s3, 1024, %s34_s26, [#allocation7], %s504_s21, %s504_s21, %s505_s22  }
  0x18   :  { %499 = dma.done.wait [#allocation5], 1024  }
  0x19   :  { %500 = vsyncadd [#allocation5], 4294966272 }
  0x1a   :  { %501 = dma.done.wait [#allocation7], 1024  }
  0x1b   :  { %502 = vsyncadd [#allocation7], 4294966272  ;;  %v507_v0 = vmov 0.0   ;;  %vm508_vm0 = vmmov 0   ;;  %v434_v1 = vld [vmem:[#allocation4 + $0x38] sm:$0xff]   ;;  %v435_v2 = vld [vmem:[#allocation4 + $0x30] sm:$0xff]  }
  0x1c   :  { %388 = vmatprep.subr.bf16.mxu0 %v507_v0  ;;  %408 = vmatprep.subr.bf16.mxu1 %v507_v0  ;;  %v436_v3 = vld [vmem:[#allocation4 + $0x28] sm:$0xff]   ;;  %v442_v4 = vld [vmem:[#allocation6 + $0x38] sm:$0xff]   ;;  %v437_v5 = vld [vmem:[#allocation4 + $0x20] sm:$0xff]  }
  0x1d   :  { %404 = vmatprep.mubr.msk.bf16.mxu0 %vm508_vm0, %v507_v0  ;;  %424 = vmatprep.mubr.msk.bf16.mxu1 %vm508_vm0, %v507_v0  ;;  %v444_v6 = vld [vmem:[#allocation6 + $0x30] sm:$0xff]   ;;  %v438_v7 = vld [vmem:[#allocation4 + $0x18] sm:$0xff]   ;;  %v445_v8 = vld [vmem:[#allocation6 + $0x28] sm:$0xff]  }
  0x1e   :  { %389 = vmatpush3.bf16.msra.mxu0 %v434_v1  ;;  %409 = vmatpush3.bf16.msra.mxu1 %v442_v4  ;;  %v439_v9 = vld [vmem:[#allocation4 + $0x10] sm:$0xff]   ;;  %v446_v10 = vld [vmem:[#allocation6 + $0x20] sm:$0xff]   ;;  %v440_v11 = vld [vmem:[#allocation4 + $0x8] sm:$0xff]  }
  0x1f   :  { %390 = vmatprep.subr.bf16.mxu0 %v507_v0  ;;  %410 = vmatprep.subr.bf16.mxu1 %v507_v0  ;;  %v447_v12 = vld [vmem:[#allocation6 + $0x18] sm:$0xff]   ;;  %v441_v13 = vld [vmem:[#allocation4] sm:$0xff]   ;;  %v448_v14 = vld [vmem:[#allocation6 + $0x10] sm:$0xff]  }
  0x20   :  { %v443_v15 = vld [vmem:[%s557_s0] sm:$0xff]   ;;  %v449_v16 = vld [vmem:[#allocation6 + $0x8] sm:$0xff]  }
  0x21   :  { %v450_v17 = vld [vmem:[#allocation6] sm:$0xff]  }
  0x22   :  { %391 = vmatpush3.bf16.msra.mxu0 %v435_v2  ;;  %411 = vmatpush3.bf16.msra.mxu1 %v444_v6  ;;  %v340_v18 = vld [vmem:[%s559_s2] ss:$0 sm:$0xff] }
  0x23   :  { %392 = vmatprep.subr.bf16.mxu0 %v507_v0  ;;  %412 = vmatprep.subr.bf16.mxu1 %v507_v0  ;;  %v341_v36 = vld [vmem:[%s561_s4] ss:$0 sm:$0xff] }
  0x26   :  { %393 = vmatpush3.bf16.msra.mxu0 %v436_v3  ;;  %413 = vmatpush3.bf16.msra.mxu1 %v445_v8 }
  0x27   :  { %394 = vmatprep.subr.bf16.mxu0 %v507_v0  ;;  %414 = vmatprep.subr.bf16.mxu1 %v507_v0 }
  0x2a   :  { %395 = vmatpush3.bf16.msra.mxu0 %v437_v5  ;;  %415 = vmatpush3.bf16.msra.mxu1 %v446_v10 }
  0x2b   :  { %396 = vmatprep.subr.bf16.mxu0 %v507_v0  ;;  %416 = vmatprep.subr.bf16.mxu1 %v507_v0 }
  0x2e   :  { %397 = vmatpush3.bf16.msra.mxu0 %v438_v7  ;;  %417 = vmatpush3.bf16.msra.mxu1 %v447_v12 }
  0x2f   :  { %398 = vmatprep.subr.bf16.mxu0 %v507_v0  ;;  %418 = vmatprep.subr.bf16.mxu1 %v507_v0 }
  0x32   :  { %399 = vmatpush3.bf16.msra.mxu0 %v439_v9  ;;  %419 = vmatpush3.bf16.msra.mxu1 %v448_v14 }
  0x33   :  { %400 = vmatprep.subr.bf16.mxu0 %v507_v0  ;;  %420 = vmatprep.subr.bf16.mxu1 %v507_v0 }
  0x36   :  { %401 = vmatpush3.bf16.msra.mxu0 %v440_v11  ;;  %421 = vmatpush3.bf16.msra.mxu1 %v449_v16 }
  0x37   :  { %402 = vmatprep.subr.bf16.mxu0 %v507_v0  ;;  %422 = vmatprep.subr.bf16.mxu1 %v507_v0 }
  0x3a   :  { %403 = vmatpush3.bf16.msra.mxu0 %v441_v13  ;;  %423 = vmatpush3.bf16.msra.mxu1 %v450_v17 }
  0x3d   :  { %405 = vmatmul.mubr.bf16.vlgmr.msra.gmra.mxu0 %v443_v15  ;;  %425 = vmatmul.mubr.bf16.vlgmr.msra.gmra.mxu1 %v443_v15 }
  0xfd   :  { %v179_v19 = vpop.f32.mrf.mxu0  ;;  %v290_v27 = vpop.f32.mrf.mxu1 }
  0xfe   :  { %v186_v20 = vadd.f32 %v340_v18, %v179_v19  ;;  %v297_v38 = vadd.f32 %v341_v36, %v290_v27 }
  0xff   :  { %v406_v21 = vpop.f32.mrf.mxu0  ;;  %v426_v28 = vpop.f32.mrf.mxu1 }
 0x100   :  { %v359_v22 = vmul.f32 -1.442695, %v186_v20 }
 0x101   :  { %v182_v23 = vpop.f32.mrf.mxu0  ;;  %v293_v29 = vpop.f32.mrf.mxu1 }
 0x102   :  { %451 = vpow2.f32 %v359_v22  ;;  %v187_v24 = vadd.f32 %v340_v18, %v182_v23  ;;  %v298_v41 = vadd.f32 %v341_v36, %v293_v29 }
 0x103   :  { %v407_v25 = vpop.f32.mrf.mxu0  ;;  %v427_v30 = vpop.f32.mrf.mxu1 }
 0x104   :  { %v360_v26 = vmul.f32 -1.442695, %v187_v24 }
 0x106   :  { %453 = vpow2.f32 %v360_v26 }
 0x10f   :  { %v452_v31 = vpop.eup %451 }
 0x110   :  { %v314_v32 = vadd.f32 1.0, %v452_v31 }
 0x112   :  { %455 = vrcp.f32 %v314_v32 }
 0x113   :  { %v454_v33 = vpop.eup %453 }
 0x114   :  { %v315_v34 = vadd.f32 1.0, %v454_v33 }
 0x116   :  { %457 = vrcp.f32 %v315_v34 }
 0x11f   :  { %v456_v35 = vpop.eup %455 }
 0x120   :  { %v320_v37 = vmul.f32 %v456_v35, %v186_v20 }
 0x122   :  { %v322_v42 = vmul.f32 %v320_v37, %v297_v38 }
 0x123   :  { %v458_v39 = vpop.eup %457 }
 0x124   :  { %v321_v40 = vmul.f32 %v458_v39, %v187_v24 }
 0x126   :  { %v323_v43 = vmul.f32 %v321_v40, %v298_v41 }
 0x128   :  { %v368_v44 = vpack.c.bf16 %v323_v43, %v322_v42 }
 0x12a   :  { %369 = vst [vmem:[%s562_s5] sm:$0xff] %v368_v44  }
 0x12b   :  { %338 = vsyncpa [#allocation5], 1 }
 0x12c   :  { %339 = vsyncpa [#allocation7], 1 }

</bundles_post_ra>
